<compile_context>
chip_gen: v7x
topology: tpu7x:2x2x1
jax: 0.10.0
libtpu: 0.0.40
codegen_flags: <defaults>
</compile_context>

<pallas_src>
import functools
import math

import jax
import jax.numpy as jnp
from jax.experimental import pallas as pl
from jax.experimental.pallas import tpu as pltpu


_MIN_GRID_STEPS = 8                   # target steps so both v7x TCs get work
_MIN_SPLIT_BYTES = 8 * 1024 * 1024    # ...but only when the input is big enough


def _round_down(v, m):
    return (v // m) * m


@functools.lru_cache(maxsize=1)
def _physical_vmem_bytes():
    try:
        info = pltpu.get_tpu_info()
        v = int(getattr(info, "vmem_capacity_bytes", 0) or 0)
        if v > 0:
            return v
    except Exception:
        pass
    return 64 * 1024 * 1024            # conservative default (v7x per-TC)


def _big_vmem():
    return _physical_vmem_bytes() >= 96 * 1024 * 1024


def _tile_target_bytes(itemsize):
    # f32 inputs can take bigger tiles; bf16 tiles stay smaller because the
    # f32 upcast intermediates double the VMEM footprint.
    if itemsize >= 4:
        return (8 if _big_vmem() else 6) * 1024 * 1024
    return 4 * 1024 * 1024


def _vmem_limit_bytes(tile_bytes, tile_elems, f32_temps=3):
    # 2x double-buffered input + 2x double-buffered output + f32 temporaries
    # Mosaic materializes (upcast tile, x*x, result, ...) + params headroom.
    want = 4 * int(tile_bytes) + f32_temps * int(tile_elems) * 4 + 4 * 1024 * 1024
    cap = (100 if _big_vmem() else 52) * 1024 * 1024
    return int(min(max(want, 16 * 1024 * 1024), cap))


def _cost(rows, c, itemsize):
    # Purely bandwidth-bound: give XLA an accurate picture for scheduling.
    return pl.CostEstimate(
        flops=int(12 * rows * c),
        transcendentals=int(rows),
        bytes_accessed=int(2 * rows * c * itemsize),
    )


def _maybe_split_for_cores(n, block, unit, total_bytes):
    """Shrink `block` so a 1-D grid over `n` has >= _MIN_GRID_STEPS steps.

    Only on 2-TC parts (v7x heuristic: <96 MiB physical VMEM) and only when the
    input is large enough that per-step overhead stays negligible.
    """
    if _big_vmem():                      # v5e/v6e: single TensorCore
        return block
    if total_bytes < _MIN_SPLIT_BYTES:
        return block
    if pl.cdiv(n, block) >= _MIN_GRID_STEPS:
        return block
    return max(unit, _round_down(pl.cdiv(n, _MIN_GRID_STEPS), unit))


# ----------------------------------------------------------------------------
# channels_last, C a multiple of 128 (or fallback): rows on sublanes, C on
# lanes, reduce over the lane axis.
# ----------------------------------------------------------------------------
def _ln_rows_kernel(x_ref, w_ref, b_ref, o_ref, *, eps, inv_c):
    x = x_ref[...].astype(jnp.float32)                 # (TM, C)
    s1 = jnp.sum(x, axis=-1, keepdims=True)            # one pass: sum / sum-sq
    s2 = jnp.sum(x * x, axis=-1, keepdims=True)
    mean = s1 * inv_c
    var = jnp.maximum(s2 * inv_c - mean * mean, 0.0)   # biased (matches F.layer_norm)
    inv = jax.lax.rsqrt(var + eps)                     # EUP slot
    w = w_ref[...].astype(jnp.float32)                 # (1, C)
    b = b_ref[...].astype(jnp.float32)
    o_ref[...] = ((x - mean) * inv * w + b).astype(o_ref.dtype)


def _layer_norm_rows(x2d, weight, bias, eps, block_rows=None):
    """LayerNorm over the last axis of a (N, C) array."""
    N, C = x2d.shape
    itemsize = jnp.dtype(x2d.dtype).itemsize
    row_bytes = C * itemsize
    if block_rows is None:
        target = _tile_target_bytes(itemsize)
        block_rows = max(8, _round_down(max(8, target // max(1, row_bytes)), 8))
        block_rows = _maybe_split_for_cores(N, block_rows, 8, N * row_bytes)
    if block_rows >= N:
        block_rows = N                                  # full-extent block (legal)
    tile_bytes = block_rows * row_bytes
    tile_elems = block_rows * C
    # TODO(synk): assumes one (>=8, C) tile fits VMEM; gigantic C would need a
    # two-stage lane reduction.

    return pl.pallas_call(
        functools.partial(_ln_rows_kernel, eps=eps, inv_c=1.0 / C),
        out_shape=jax.ShapeDtypeStruct((N, C), x2d.dtype),
        grid=(pl.cdiv(N, block_rows),),                 # ragged tail masked by Pallas
        in_specs=[
            pl.BlockSpec((block_rows, C), lambda i: (i, 0)),
            pl.BlockSpec((1, C), lambda i: (0, 0)),     # constant block -> fetched once
            pl.BlockSpec((1, C), lambda i: (0, 0)),
        ],
        out_specs=pl.BlockSpec((block_rows, C), lambda i: (i, 0)),
        compiler_params=pltpu.CompilerParams(
            dimension_semantics=("parallel",),
            vmem_limit_bytes=_vmem_limit_bytes(tile_bytes, tile_elems),
        ),
        cost_estimate=_cost(N, C, itemsize),
    )(x2d, weight.reshape(1, C), bias.reshape(1, C))


# ----------------------------------------------------------------------------
# channels_last, C NOT a multiple of 128 (e.g. ConvNeXt 96/192): pack G rows
# per kernel row so the lane dim (G*C) is a multiple of 128 (lane-dense,
# unmasked stores).  Per-group sums / broadcast use a 0/1 segment matrix on
# the otherwise-idle MXU.
# ----------------------------------------------------------------------------
def _ln_rows_grouped_kernel(x_ref, w_ref, b_ref, seg_ref, segt_ref, o_ref, *, eps, inv_c):
    hp = jax.lax.Precision.HIGHEST                      # f32-accurate segment sums
    x = x_ref[...].astype(jnp.float32)                  # (TM, G*C)
    seg = seg_ref[...]                                   # (G*C, 128) one-hot group
    segt = segt_ref[...]                                 # (128, G*C)
    s1 = jnp.dot(x, seg, preferred_element_type=jnp.float32, precision=hp)
    s2 = jnp.dot(x * x, seg, preferred_element_type=jnp.float32, precision=hp)
    mean = s1 * inv_c                                    # (TM, 128); cols >= G unused
    var = jnp.maximum(s2 * inv_c - mean * mean, 0.0)
    inv = jax.lax.rsqrt(var + eps)
    mean_f = jnp.dot(mean, segt, preferred_element_type=jnp.float32, precision=hp)
    inv_f = jnp.dot(inv, segt, preferred_element_type=jnp.float32, precision=hp)
    w = w_ref[...].astype(jnp.float32)                   # (1, G*C) tiled weight
    b = b_ref[...].astype(jnp.float32)
    o_ref[...] = ((x - mean_f) * inv_f * w + b).astype(o_ref.dtype)


def _layer_norm_rows_grouped(x2d, weight, bias, eps, group, block_rows=None):
    N, C = x2d.shape
    G = int(group)
    assert N % G == 0 and (G * C) % 128 == 0
    Ng, CG = N // G, G * C
    itemsize = jnp.dtype(x2d.dtype).itemsize
    row_bytes = CG * itemsize
    if block_rows is None:
        # Slightly smaller target: two extra full-size f32 temps (mean/inv broadcast).
        target = (_tile_target_bytes(itemsize) * 3) // 4
        block_rows = max(8, _round_down(max(8, target // max(1, row_bytes)), 8))
        block_rows = _maybe_split_for_cores(Ng, block_rows, 8, Ng * row_bytes)
    if block_rows >= Ng:
        block_rows = Ng
    tile_bytes = block_rows * row_bytes
    tile_elems = block_rows * CG

    xg = x2d.reshape(Ng, CG)                              # contiguous row merge
    wg = jnp.tile(weight, G).reshape(1, CG)
    bg = jnp.tile(bias, G).reshape(1, CG)
    GP = 128                                              # group axis padded to 128 lanes
    seg = (jnp.arange(CG)[:, None] // C == jnp.arange(GP)[None, :]).astype(jnp.float32)
    segt = seg.T

    out = pl.pallas_call(
        functools.partial(_ln_rows_grouped_kernel, eps=eps, inv_c=1.0 / C),
        out_shape=jax.ShapeDtypeStruct((Ng, CG), x2d.dtype),
        grid=(pl.cdiv(Ng, block_rows),),
        in_specs=[
            pl.BlockSpec((block_rows, CG), lambda i: (i, 0)),
            pl.BlockSpec((1, CG), lambda i: (0, 0)),
            pl.BlockSpec((1, CG), lambda i: (0, 0)),
            pl.BlockSpec((CG, GP), lambda i: (0, 0)),
            pl.BlockSpec((GP, CG), lambda i: (0, 0)),
        ],
        out_specs=pl.BlockSpec((block_rows, CG), lambda i: (i, 0)),
        compiler_params=pltpu.CompilerParams(
            dimension_semantics=("parallel",),
            vmem_limit_bytes=_vmem_limit_bytes(tile_bytes, tile_elems, f32_temps=5),
        ),
        cost_estimate=_cost(N, C, itemsize),
    )(xg, wg, bg, seg, segt)
    return out.reshape(N, C)


# ----------------------------------------------------------------------------
# channels_first: (B, C, H*W), C on sublanes, H*W on lanes, reduce over C.
# Small per-image footprint -> block over batch; large -> tile the lane axis.
# ----------------------------------------------------------------------------
def _ln_chan_kernel(x_ref, w_ref, b_ref, o_ref, *, eps, inv_c):
    x = x_ref[...].astype(jnp.float32)                  # (TB, C, TL)
    s1 = jnp.sum(x, axis=1, keepdims=True)              # sublane reduce
    s2 = jnp.sum(x * x, axis=1, keepdims=True)
    mean = s1 * inv_c
    var = jnp.maximum(s2 * inv_c - mean * mean, 0.0)
    inv = jax.lax.rsqrt(var + eps)
    w = w_ref[...].astype(jnp.float32)                  # (1, C, 1)
    b = b_ref[...].astype(jnp.float32)
    o_ref[...] = ((x - mean) * inv * w + b).astype(o_ref.dtype)


def _layer_norm_channels_first(x, weight, bias, eps, tile_l=None, block_b=None):
    assert x.ndim == 4, "channels_first path expects (B, C, H, W)"
    B, C, H, W = x.shape
    L = H * W
    x3 = x.reshape(B, C, L)                             # free reshape, no transpose
    itemsize = jnp.dtype(x.dtype).itemsize
    target = _tile_target_bytes(itemsize)
    per_image_bytes = C * L * itemsize
    w3 = weight.reshape(1, C, 1)
    b3 = bias.reshape(1, C, 1)
    kern = functools.partial(_ln_chan_kernel, eps=eps, inv_c=1.0 / C)
    cost = _cost(B * L, C, itemsize)

    use_batch_blocks = (block_b is not None) or (tile_l is None and per_image_bytes <= target)
    if use_batch_blocks:
        # Late ConvNeXt stages (small H*W): fold several images into one tile.
        if block_b is None:
            block_b = max(1, target // max(1, per_image_bytes))
            block_b = _maybe_split_for_cores(B, block_b, 1, B * per_image_bytes)
        block_b = min(block_b, B)
        tile_bytes = block_b * per_image_bytes
        tile_elems = block_b * C * L
        out = pl.pallas_call(
            kern,
            out_shape=jax.ShapeDtypeStruct((B, C, L), x.dtype),
            grid=(pl.cdiv(B, block_b),),
            in_specs=[
                pl.BlockSpec((block_b, C, L), lambda b: (b, 0, 0)),
                pl.BlockSpec((1, C, 1), lambda b: (0, 0, 0)),
                pl.BlockSpec((1, C, 1), lambda b: (0, 0, 0)),
            ],
            out_specs=pl.BlockSpec((block_b, C, L), lambda b: (b, 0, 0)),
            compiler_params=pltpu.CompilerParams(
                dimension_semantics=("parallel",),
                vmem_limit_bytes=_vmem_limit_bytes(tile_bytes, tile_elems),
            ),
            cost_estimate=cost,
        )(x3, w3, b3)
    else:
        # Large per-image footprint: tile the lane (H*W) axis per image.
        if tile_l is None:
            tile_l = max(128, _round_down(max(128, target // max(1, C * itemsize)), 128))
            tile_l = _maybe_split_for_cores(L, tile_l, 128, B * per_image_bytes)
        if tile_l >= L:
            tile_l = L                                  # full-extent lane block
        tile_bytes = C * tile_l * itemsize
        tile_elems = C * tile_l
        out = pl.pallas_call(
            kern,
            out_shape=jax.ShapeDtypeStruct((B, C, L), x.dtype),
            grid=(B, pl.cdiv(L, tile_l)),
            in_specs=[
                pl.BlockSpec((1, C, tile_l), lambda b, l: (b, 0, l)),
                pl.BlockSpec((1, C, 1), lambda b, l: (0, 0, 0)),
                pl.BlockSpec((1, C, 1), lambda b, l: (0, 0, 0)),
            ],
            out_specs=pl.BlockSpec((1, C, tile_l), lambda b, l: (b, 0, l)),
            compiler_params=pltpu.CompilerParams(
                dimension_semantics=("parallel", "parallel"),
                vmem_limit_bytes=_vmem_limit_bytes(tile_bytes, tile_elems),
            ),
            cost_estimate=cost,
        )(x3, w3, b3)
    return out.reshape(B, C, H, W)


class LayerNormPallas:
    """JAX/Pallas port of the PyTorch LayerNorm module (both data formats)."""

    def __init__(self, normalized_shape, eps=1e-6, data_format="channels_last"):
        if data_format not in ("channels_last", "channels_first"):
            raise NotImplementedError
        self.eps = float(eps)
        self.data_format = data_format
        self.normalized_shape = (normalized_shape,)
        self.weight = jnp.ones((normalized_shape,), dtype=jnp.float32)
        self.bias = jnp.zeros((normalized_shape,), dtype=jnp.float32)

    def __call__(self, x):
        C = self.normalized_shape[0]
        if self.data_format == "channels_last":
            assert x.shape[-1] == C
            orig_shape = x.shape
            x2d = x.reshape(-1, C)
            N = x2d.shape[0]
            G = 128 // math.gcd(C, 128)                 # rows packed per lane-dense row
            if G > 1 and N % G == 0 and G * C <= 1024:
                y = _layer_norm_rows_grouped(x2d, self.weight, self.bias, self.eps, G)
            else:
                # TODO(synk): C % 128 != 0 with N % G != 0 falls back to masked
                # (lane-partial) stores.
                y = _layer_norm_rows(x2d, self.weight, self.bias, self.eps)
            return y.reshape(orig_shape)
        else:  # channels_first, NCHW — normalized over axis 1, no transposes.
            assert x.shape[1] == C
            return _layer_norm_channels_first(x, self.weight, self.bias, self.eps)


# ----------------------------------------------------------------------------
# References + tests
# ----------------------------------------------------------------------------
def _reference_channels_first(x, w, b, eps):
    u = jnp.mean(x, axis=1, keepdims=True)
    s = jnp.mean((x - u) ** 2, axis=1, keepdims=True)
    xn = (x - u) / jnp.sqrt(s + eps)
    return w[None, :, None, None] * xn + b[None, :, None, None]


def _reference_channels_last(x, w, b, eps):
    u = jnp.mean(x, axis=-1, keepdims=True)
    s = jnp.mean((x - u) ** 2, axis=-1, keepdims=True)
    xn = (x - u) * jax.lax.rsqrt(s + eps)
    return xn * w + b


if __name__ == "__main__":
    key = jax.random.PRNGKey(0)
    keys = jax.random.split(key, 8)

    # 1) channels_first NCHW (B=2, C=4, H=16, W=16): batch-blocked path.
    x_cf = jax.random.normal(keys[0], (2, 4, 16, 16), dtype=jnp.float32)
    ln_cf = LayerNormPallas(4, eps=1e-6, data_format="channels_first")
    y_cf = jax.block_until_ready(ln_cf(x_cf))
    ref_cf = _reference_channels_first(x_cf, ln_cf.weight, ln_cf.bias, ln_cf.eps)
    assert y_cf.shape == x_cf.shape
    assert jnp.allclose(y_cf, ref_cf, atol=1e-4, rtol=1e-4)

    # 2) channels_last (B=2, H=8, W=8, C=32): grouped lane-dense path (G=4).
    x_cl = jax.random.normal(keys[1], (2, 8, 8, 32), dtype=jnp.float32)
    ln_cl = LayerNormPallas(32, eps=1e-6, data_format="channels_last")
    y_cl = jax.block_until_ready(ln_cl(x_cl))
    ref_cl = _reference_channels_last(x_cl, ln_cl.weight, ln_cl.bias, ln_cl.eps)
    assert y_cl.shape == x_cl.shape
    assert jnp.allclose(y_cl, ref_cl, atol=1e-4, rtol=1e-4)

    # 3) channels_last, ConvNeXt stem width C=96: grouped path (4x96 = 384 lanes).
    x_96 = jax.random.normal(keys[2], (2, 4, 4, 96), dtype=jnp.float32)
    ln_96 = LayerNormPallas(96, eps=1e-6, data_format="channels_last")
    y_96 = jax.block_until_ready(ln_96(x_96))
    ref_96 = _reference_channels_last(x_96, ln_96.weight, ln_96.bias, ln_96.eps)
    assert jnp.allclose(y_96, ref_96, atol=1e-4, rtol=1e-4)

    # 4) grouped path, ragged row blocks + non-trivial affine params.
    w96 = 1.0 + 0.1 * jax.random.normal(keys[3], (96,), dtype=jnp.float32)
    b96 = 0.1 * jax.random.normal(keys[4], (96,), dtype=jnp.float32)
    x_rag_g = jax.random.normal(keys[5], (120, 96), dtype=jnp.float32)
    y_rag_g = jax.block_until_ready(
        _layer_norm_rows_grouped(x_rag_g, w96, b96, 1e-6, 4, block_rows=8))
    ref_rag_g = _reference_channels_last(x_rag_g, w96, b96, 1e-6)
    assert jnp.allclose(y_rag_g, ref_rag_g, atol=1e-4, rtol=1e-4)

    # 5) plain (masked) rows fallback, ragged row grid (N=50, block=16).
    x_rag = jax.random.normal(keys[6], (50, 32), dtype=jnp.float32)
    y_rag = jax.block_until_ready(
        _layer_norm_rows(x_rag, ln_cl.weight, ln_cl.bias, 1e-6, block_rows=16))
    ref_rag = _reference_channels_last(x_rag, ln_cl.weight, ln_cl.bias, 1e-6)
    assert jnp.allclose(y_rag, ref_rag, atol=1e-4, rtol=1e-4)

    # 6) channels_first lane-tiled path with ragged lane grid (L=150, tile=128).
    x_cf2 = jax.random.normal(keys[7], (2, 4, 10, 15), dtype=jnp.float32)
    y_cf2 = jax.block_until_ready(
        _layer_norm_channels_first(x_cf2, ln_cf.weight, ln_cf.bias, 1e-6, tile_l=128))
    ref_cf2 = _reference_channels_first(x_cf2, ln_cf.weight, ln_cf.bias, 1e-6)
    assert jnp.allclose(y_cf2, ref_cf2, atol=1e-4, rtol=1e-4)

    # 7) channels_first batch-blocked path with ragged batch grid (B=3, block_b=2).
    x_cf3 = jax.random.normal(keys[0], (3, 4, 16, 16), dtype=jnp.float32)
    y_cf3 = jax.block_until_ready(
        _layer_norm_channels_first(x_cf3, ln_cf.weight, ln_cf.bias, 1e-6, block_b=2))
    ref_cf3 = _reference_channels_first(x_cf3, ln_cf.weight, ln_cf.bias, 1e-6)
    assert jnp.allclose(y_cf3, ref_cf3, atol=1e-4, rtol=1e-4)

    # 8) bf16 channels_last smoke test (grouped path, f32 compute, bf16 store).
    x_bf = jax.random.normal(keys[1], (2, 8, 8, 32), dtype=jnp.float32).astype(jnp.bfloat16)
    y_bf = jax.block_until_ready(ln_cl(x_bf))
    ref_bf = _reference_channels_last(x_bf.astype(jnp.float32), ln_cl.weight, ln_cl.bias, 1e-6)
    assert jnp.allclose(y_bf.astype(jnp.float32), ref_bf, atol=5e-2, rtol=5e-2)

    print("KERNEL_OK")
</pallas_src>

<mosaic_0001>
module attributes {stable_mosaic.version = 11 : i64} {
  func.func @_ln_chan_kernel(%arg0: i32, %arg1: memref<2x4x256xf32, #tpu.memory_space<vmem>>, %arg2: memref<1x4x1xf32, #tpu.memory_space<vmem>>, %arg3: memref<1x4x1xf32, #tpu.memory_space<vmem>>, %arg4: memref<2x4x256xf32, #tpu.memory_space<vmem>>) attributes {dimension_semantics = [#tpu.dimension_semantics<parallel>], iteration_bounds = array<i64: 1>, scalar_prefetch = 0 : i64, scratch_operands = 0 : i64, tpu.core_type = #tpu.core_type<tc>, window_params = [{transform_indices = @transform_0, window_bounds = array<i64: 2, 4, 256>}, {pipeline_mode = #tpu.pipeline_mode<synchronous>, transform_indices = @transform_1, window_bounds = array<i64: 1, 4, 1>}, {pipeline_mode = #tpu.pipeline_mode<synchronous>, transform_indices = @transform_2, window_bounds = array<i64: 1, 4, 1>}, {transform_indices = @transform_3, window_bounds = array<i64: 2, 4, 256>}]} {
    %c0 = arith.constant 0 : index
    %c0_0 = arith.constant 0 : index
    %c0_1 = arith.constant 0 : index
    %0 = vector.load %arg1[%c0, %c0_0, %c0_1] : memref<2x4x256xf32, #tpu.memory_space<vmem>>, vector<2x4x256xf32>
    %cst = arith.constant dense<0.000000e+00> : vector<2x256xf32>
    %1 = vector.multi_reduction <add>, %0, %cst [1] : vector<2x4x256xf32> to vector<2x256xf32>
    %2 = vector.shape_cast %1 : vector<2x256xf32> to vector<2x1x256xf32>
    %3 = arith.mulf %0, %0 : vector<2x4x256xf32>
    %cst_2 = arith.constant dense<0.000000e+00> : vector<2x256xf32>
    %4 = vector.multi_reduction <add>, %3, %cst_2 [1] : vector<2x4x256xf32> to vector<2x256xf32>
    %5 = vector.shape_cast %4 : vector<2x256xf32> to vector<2x1x256xf32>
    %cst_3 = arith.constant 2.500000e-01 : f32
    %6 = vector.broadcast %cst_3 : f32 to vector<2x1x256xf32>
    %7 = arith.mulf %2, %6 : vector<2x1x256xf32>
    %cst_4 = arith.constant 2.500000e-01 : f32
    %8 = vector.broadcast %cst_4 : f32 to vector<2x1x256xf32>
    %9 = arith.mulf %5, %8 : vector<2x1x256xf32>
    %10 = arith.mulf %7, %7 : vector<2x1x256xf32>
    %11 = arith.subf %9, %10 : vector<2x1x256xf32>
    %cst_5 = arith.constant 0.000000e+00 : f32
    %12 = vector.broadcast %cst_5 : f32 to vector<2x1x256xf32>
    %13 = arith.maximumf %11, %12 : vector<2x1x256xf32>
    %cst_6 = arith.constant 9.99999997E-7 : f32
    %14 = vector.broadcast %cst_6 : f32 to vector<2x1x256xf32>
    %15 = arith.addf %13, %14 : vector<2x1x256xf32>
    %16 = math.rsqrt %15 : vector<2x1x256xf32>
    %c0_7 = arith.constant 0 : index
    %c0_8 = arith.constant 0 : index
    %c0_9 = arith.constant 0 : index
    %17 = vector.load %arg2[%c0_7, %c0_8, %c0_9] : memref<1x4x1xf32, #tpu.memory_space<vmem>>, vector<1x4x1xf32>
    %c0_10 = arith.constant 0 : index
    %c0_11 = arith.constant 0 : index
    %c0_12 = arith.constant 0 : index
    %18 = vector.load %arg3[%c0_10, %c0_11, %c0_12] : memref<1x4x1xf32, #tpu.memory_space<vmem>>, vector<1x4x1xf32>
    %19 = vector.broadcast %7 : vector<2x1x256xf32> to vector<2x4x256xf32>
    %20 = arith.subf %0, %19 : vector<2x4x256xf32>
    %21 = vector.broadcast %16 : vector<2x1x256xf32> to vector<2x4x256xf32>
    %22 = arith.mulf %20, %21 : vector<2x4x256xf32>
    %23 = vector.broadcast %17 : vector<1x4x1xf32> to vector<2x4x256xf32>
    %24 = arith.mulf %22, %23 : vector<2x4x256xf32>
    %25 = vector.broadcast %18 : vector<1x4x1xf32> to vector<2x4x256xf32>
    %26 = arith.addf %24, %25 : vector<2x4x256xf32>
    %c0_13 = arith.constant 0 : index
    %c0_14 = arith.constant 0 : index
    %c0_15 = arith.constant 0 : index
    %27 = vector.load %arg4[%c0_13, %c0_14, %c0_15] : memref<2x4x256xf32, #tpu.memory_space<vmem>>, vector<2x4x256xf32>
    tpu.vector_store %arg4[%c0_13, %c0_14, %c0_15], %26 {strides = array<i32>} : memref<2x4x256xf32, #tpu.memory_space<vmem>>, vector<2x4x256xf32>,
    return
  }
  func.func @transform_0(%arg0: i32) -> (i32, i32, i32) {
    %c0_i32 = arith.constant 0 : i32
    %c0_i32_0 = arith.constant 0 : i32
    %c0_i32_1 = arith.constant 0 : i32
    return %arg0, %c0_i32, %c0_i32_0 : i32, i32, i32
  }
  func.func @transform_1(%arg0: i32) -> (i32, i32, i32) {
    %c0_i32 = arith.constant 0 : i32
    %c0_i32_0 = arith.constant 0 : i32
    %c0_i32_1 = arith.constant 0 : i32
    %c0_i32_2 = arith.constant 0 : i32
    return %c0_i32, %c0_i32_0, %c0_i32_1 : i32, i32, i32
  }
  func.func @transform_2(%arg0: i32) -> (i32, i32, i32) {
    %c0_i32 = arith.constant 0 : i32
    %c0_i32_0 = arith.constant 0 : i32
    %c0_i32_1 = arith.constant 0 : i32
    %c0_i32_2 = arith.constant 0 : i32
    return %c0_i32, %c0_i32_0, %c0_i32_1 : i32, i32, i32
  }
  func.func @transform_3(%arg0: i32) -> (i32, i32, i32) {
    %c0_i32 = arith.constant 0 : i32
    %c0_i32_0 = arith.constant 0 : i32
    %c0_i32_1 = arith.constant 0 : i32
    return %arg0, %c0_i32, %c0_i32_0 : i32, i32, i32
  }
}

</mosaic_0001>

<bundles_post_ra>
// kernel: tpu_custom_call.1
= control target key start
LH: loop header
LB: loop body
LE: loop exit
PB: predicated region body
PF: predicated region fallthrough
CT: control target
= control target key end

     0   :  { %8 = vsyncpa [#allocation3], 0  ;;  %s350_s0 = inlined_call_operand.hbm [shape: f32[2,4,256], index: 0, kind: input, shape index: {}]   ;;  %s351_s1 = inlined_call_operand.vmem [shape: f32[1,4,1], index: 1, kind: input, shape index: {}]   ;;  %s352_s2 = inlined_call_operand.vmem [shape: f32[1,4,1], index: 2, kind: input, shape index: {}]   ;;  %s353_s3 = inlined_call_operand.hbm [shape: f32[2,4,256], index: 3, kind: output, shape index: {}]  }
   0x1   :  { %9 = vsyncpa [#allocation4], 0  ;;  %s264_s12 = smov [#allocation2]   ;;  %s216_s16 = scalar_lea.hbm %s350_s0, 256 }
   0x2   :  { %s15_s13 = sshll.u32 %s264_s12, 4  ;;  %p217_p0 = scmp.ne.s32.totalorder %s350_s0, %s216_s16  ;;  %s16_s13 = int_to_ptr.vmem [resolvable:$true] %s15_s13 }
   0x3   :  { %p220_p1 = scmp.lt.u32.totalorder %s216_s16, %s350_s0 }
   0x5   :  { %p222_p2 = pnand %p220_p1, %p217_p0 }
   0x7   :  { %225 = shalt.err (!%p222_p2)
}
   0x8   :  { %s226_s21 = scalar_lea.vmem %s16_s13, 256  ;;  %p231_p4 = scmp.lt.s32.totalorder %s16_s13, %s16_s13 }
   0x9   :  { %p227_p3 = scmp.ne.s32.totalorder %s16_s13, %s226_s21  ;;  %p232_p5 = scmp.lt.s32.totalorder %s226_s21, %s226_s21 }
   0xb   :  { %p233_p6 = por %p232_p5, %p231_p4 }
   0xd   :  { %p234_p7 = pnand %p233_p6, %p227_p3 }
   0xf   :  { %237 = shalt.err (!%p234_p7)
}
  0x10   :  { %s265_s22 = smov 128   ;;  %s266_s23 = smov 8  }
  0x11   :  { %21 = dma.hbm_to_vmem [thread:$0]  %s350_s0, 256, %s16_s13, [#allocation3], %s265_s22, %s265_s22, %s266_s23  }
  0x12   :  { %260 = dma.done.wait [#allocation3], 256  }
  0x13   :  { %261 = vsyncadd [#allocation3], 4294967040  ;;  %v267_v0 = vmov 0   ;;  %v130_v1 = vld [vmem:[%s351_s1] sm:$0xf]  ;;  %v313_v4 = vld [vmem:[#allocation2 + $0x8] sm:$0xff] }
  0x14   :  { %205 = vset.pattern.permute.xlu0 %v267_v0  ;;  %v131_v2 = vld [vmem:[%s352_s2] sm:$0xf]  ;;  %vm37_vm0 = vcmask 1043456   ;;  %v34_v7 = vcombine.high %v313_v4, %v313_v4  ;;  %v67_v8 = vmul.f32 %v313_v4, %v313_v4  ;;  %s269_s0 = smov [#allocation5]  }
  0x15   :  { %154 = vperm.xlu0 %205, %v130_v1   ;;  %v311_v3 = vld [vmem:[#allocation2] sm:$0xff]  ;;  %v52_v12 = vsel %vm37_vm0, %v313_v4, 0.0  ;;  %s187_s1 = sshll.u32 %s269_s0, 4  ;;  %s188_s1 = int_to_ptr.vmem [resolvable:$true] %s187_s1 }
  0x16   :  { %v33_v5 = vcombine.high %v311_v3, %v311_v3  ;;  %v66_v6 = vmul.f32 %v311_v3, %v311_v3  ;;  %v38_v9 = vsel %vm37_vm0, %v311_v3, 0.0  ;;  %v59_v14 = vsel %vm37_vm0, %v34_v7, 0.0  ;;  %s238_s2 = scalar_lea.vmem %s188_s1, 256  ;;  %p243_p9 = scmp.lt.s32.totalorder %s188_s1, %s188_s1 }
  0x17   :  { %v39_v13 = vrot.slane %v38_v9, 4  ;;  %v71_v15 = vcombine.high %v67_v8, %v67_v8  ;;  %v53_v18 = vrot.slane %v52_v12, 4  ;;  %v60_v20 = vrot.slane %v59_v14, 4  ;;  %p239_p8 = scmp.ne.s32.totalorder %s188_s1, %s238_s2  ;;  %p244_p10 = scmp.lt.s32.totalorder %s238_s2, %s238_s2 }
  0x18   :  { %v45_v10 = vsel %vm37_vm0, %v33_v5, 0.0  ;;  %v70_v11 = vcombine.high %v66_v6, %v66_v6  ;;  %v74_v17 = vsel %vm37_vm0, %v66_v6, 0.0  ;;  %v88_v21 = vsel %vm37_vm0, %v67_v8, 0.0 }
  0x19   :  { %168 = vperm.xlu0 %205, %v131_v2   ;;  %v46_v16 = vrot.slane %v45_v10, 4  ;;  %v40_v22 = vadd.f32 %v39_v13, %v38_v9  ;;  %v75_v23 = vrot.slane %v74_v17, 4  ;;  %v95_v24 = vsel %vm37_vm0, %v71_v15, 0.0  ;;  %p245_p11 = por %p244_p10, %p243_p9 }
  0x1a   :  { %v81_v19 = vsel %vm37_vm0, %v70_v11, 0.0  ;;  %v54_v27 = vadd.f32 %v53_v18, %v52_v12  ;;  %v89_v28 = vrot.slane %v88_v21, 4  ;;  %v61_v29 = vadd.f32 %v60_v20, %v59_v14 }
  0x1b   :  { %v47_v25 = vadd.f32 %v46_v16, %v45_v10  ;;  %v82_v26 = vrot.slane %v81_v19, 4  ;;  %v96_v30 = vrot.slane %v95_v24, 4  ;;  %v41_v31 = vrot.slane %v40_v22, 2  ;;  %p246_p12 = pnand %p245_p11, %p239_p8 }
  0x1c   :  { %v76_v32 = vadd.f32 %v75_v23, %v74_v17  ;;  %v55_v35 = vrot.slane %v54_v27, 2  ;;  %v90_v36 = vadd.f32 %v89_v28, %v88_v21  ;;  %v62_v37 = vrot.slane %v61_v29, 2 }
  0x1d   :  { %v48_v33 = vrot.slane %v47_v25, 2  ;;  %v83_v34 = vadd.f32 %v82_v26, %v81_v19  ;;  %v97_v38 = vadd.f32 %v96_v30, %v95_v24  ;;  %v42_v39 = vadd.f32 %v41_v31, %v40_v22 }
  0x1e   :  { %v77_v40 = vrot.slane %v76_v32, 2  ;;  %v56_v43 = vadd.f32 %v55_v35, %v54_v27  ;;  %v91_v44 = vrot.slane %v90_v36, 2  ;;  %v63_v45 = vadd.f32 %v62_v37, %v61_v29 }
  0x1f   :  { %v49_v41 = vadd.f32 %v48_v33, %v47_v25  ;;  %v84_v42 = vrot.slane %v83_v34, 2  ;;  %v98_v46 = vrot.slane %v97_v38, 2  ;;  %v43_v47 = vrot.slane %v42_v39, 1 }
  0x20   :  { %v78_v48 = vadd.f32 %v77_v40, %v76_v32  ;;  %v57_v51 = vrot.slane %v56_v43, 1  ;;  %v92_v52 = vadd.f32 %v91_v44, %v90_v36  ;;  %v64_v53 = vrot.slane %v63_v45, 1 }
  0x21   :  { %v50_v49 = vrot.slane %v49_v41, 1  ;;  %v85_v50 = vadd.f32 %v84_v42, %v83_v34  ;;  %v99_v54 = vadd.f32 %v98_v46, %v97_v38  ;;  %v44_v55 = vadd.f32 %v43_v47, %v42_v39 }
  0x22   :  { %v79_v56 = vrot.slane %v78_v48, 1  ;;  %v58_v59 = vadd.f32 %v57_v51, %v56_v43  ;;  %v93_v60 = vrot.slane %v92_v52, 1  ;;  %v65_v61 = vadd.f32 %v64_v53, %v63_v45 }
  0x23   :  { %v51_v57 = vadd.f32 %v50_v49, %v49_v41  ;;  %v86_v58 = vrot.slane %v85_v50, 1  ;;  %v100_v62 = vrot.slane %v99_v54, 1  ;;  %v102_v0 = vmul.f32 0.25, %v44_v55 }
  0x24   :  { %v80_v63 = vadd.f32 %v79_v56, %v78_v48  ;;  %v94_v5 = vadd.f32 %v93_v60, %v92_v52  ;;  %v104_v6 = vmul.f32 0.25, %v58_v59  ;;  %v105_v8 = vmul.f32 0.25, %v65_v61 }
  0x25   :  { %v87_v1 = vadd.f32 %v86_v58, %v85_v50  ;;  %v103_v2 = vmul.f32 0.25, %v51_v57  ;;  %v101_v7 = vadd.f32 %v100_v62, %v99_v54  ;;  %v110_v10 = vmul.f32 %v102_v0, %v102_v0 }
  0x26   :  { %v106_v9 = vmul.f32 0.25, %v80_v63  ;;  %v108_v13 = vmul.f32 0.25, %v94_v5  ;;  %v112_v14 = vmul.f32 %v104_v6, %v104_v6  ;;  %v113_v16 = vmul.f32 %v105_v8, %v105_v8 }
  0x27   :  { %v107_v11 = vmul.f32 0.25, %v87_v1  ;;  %v111_v12 = vmul.f32 %v103_v2, %v103_v2  ;;  %v109_v15 = vmul.f32 0.25, %v101_v7  ;;  %v268_v29 = vmov 839922192  }
  0x28   :  { %v114_v17 = vsub.f32 %v106_v9, %v110_v10  ;;  %v116_v19 = vsub.f32 %v108_v13, %v112_v14  ;;  %v157_v30 = vunpack.c.l.s4 %v268_v29  ;;  %v159_v31 = vlaneseq }
  0x29   :  { %v115_v18 = vsub.f32 %v107_v11, %v111_v12  ;;  %v117_v20 = vsub.f32 %v109_v15, %v113_v16  ;;  %v136_v37 = vcombine.low %v102_v0, %v103_v2  ;;  %v137_v38 = vcombine.low %v104_v6, %v105_v8 }
  0x2a   :  { %v118_v21 = vmax.f32 %v114_v17, 0.0  ;;  %v120_v23 = vmax.f32 %v116_v19, 0.0  ;;  %v158_v34 = vunpack.c.0.s8 %v157_v30  ;;  %v160_v35 = vshrl.u32 %v159_v31, 7 }
  0x2b   :  { %v119_v22 = vmax.f32 %v115_v18, 0.0  ;;  %v121_v24 = vmax.f32 %v117_v20, 0.0  ;;  %v140_v41 = vsub.f32 %v311_v3, %v136_v37  ;;  %v141_v42 = vsub.f32 %v313_v4, %v137_v38 }
  0x2c   :  { %v122_v25 = vadd.f32 1e-06, %v118_v21  ;;  %v124_v27 = vadd.f32 1e-06, %v120_v23  ;;  %v161_v40 = vsub.s32 %v158_v34, %v160_v35 }
  0x2d   :  { %v123_v26 = vadd.f32 1e-06, %v119_v22  ;;  %v125_v28 = vadd.f32 1e-06, %v121_v24 }
  0x2e   :  { %208 = vrsqrt.f32 %v122_v25 }
  0x2f   :  { %210 = vrsqrt.f32 %v123_v26 }
  0x30   :  { %212 = vrsqrt.f32 %v124_v27 }
  0x31   :  { %214 = vrsqrt.f32 %v125_v28 }
  0x38   :  { %v209_v32 = vpop.eup %208 }
  0x39   :  { %v211_v33 = vpop.eup %210 }
  0x3a   :  { %v213_v36 = vpop.eup %212  ;;  %v146_v43 = vcombine.low %v209_v32, %v211_v33 }
  0x3b   :  { %v215_v39 = vpop.eup %214 }
  0x3c   :  { %v147_v44 = vcombine.low %v213_v36, %v215_v39  ;;  %v150_v46 = vmul.f32 %v146_v43, %v140_v41 }
  0x3e   :  { %v151_v47 = vmul.f32 %v147_v44, %v141_v42 }
  0x94   :  { %v155_v45 = vpop.permute.xlu0 %154 }
  0x95   :  { %v162_v48 = vrot.slane %v155_v45, %v161_v40 }
  0x97   :  { %v164_v50 = vmul.f32 %v162_v48, %v150_v46  ;;  %v165_v51 = vmul.f32 %v162_v48, %v151_v47 }
  0x98   :  { %v169_v49 = vpop.permute.xlu0 %168 }
  0x99   :  { %v176_v52 = vrot.slane %v169_v49, %v161_v40 }
  0x9b   :  { %v178_v53 = vadd.f32 %v176_v52, %v164_v50  ;;  %v179_v54 = vadd.f32 %v176_v52, %v165_v51 }
  0x9d   :  { %180 = vst [vmem:[#allocation5] sm:$0xff] %v178_v53  ;;  %181 = vst [vmem:[#allocation5 + $0x8] sm:$0xff] %v179_v54 }
  0x9e   :  { %249 = shalt.err (!%p246_p12)
}
  0x9f   :  { %s250_s5 = scalar_lea.hbm %s353_s3, 256 }
  0xa0   :  { %p251_p13 = scmp.ne.s32.totalorder %s353_s3, %s250_s5  ;;  %p254_p0 = scmp.lt.u32.totalorder %s250_s5, %s353_s3 }
  0xa2   :  { %p256_p1 = pnand %p254_p0, %p251_p13 }
  0xa4   :  { %259 = shalt.err (!%p256_p1)
}
  0xa5   :  { %193 = dma.vmem_to_hbm [thread:$0]  %s188_s1, 256, %s353_s3, [#allocation4], %s265_s22, %s265_s22, %s266_s23  }
  0xa6   :  { %262 = dma.done.wait [#allocation4], 256  }
  0xa7   :  { %263 = vsyncadd [#allocation4], 4294967040 }
  0xa8   :  { %197 = vsyncpa [#allocation3], 1 }
  0xa9   :  { %198 = vsyncpa [#allocation4], 1 }

</bundles_post_ra>
